<compile_context>
chip_gen: v5e
topology: v5e:2x2
jax: 0.10.0
libtpu: 0.0.40
codegen_flags: <defaults>
</compile_context>

<pallas_src>
import functools

import jax
import jax.numpy as jnp
from jax import lax
from jax.experimental import pallas as pl
from jax.experimental.pallas import tpu as pltpu

_LANES = 128
_MAX_TILE_ROWS = 1024   # 1024 x 128 x 4B = 512 KiB per f32 input block
_ACC_ROWS = 8           # one vreg of per-lane partial sums


def _l1_log_partial_kernel(o_ref, t_ref, out_ref, *, n_rows, tile_rows,
                           tiles_per_core, needs_mask):
    i = pl.program_id(1)

    # Zero the resident accumulator block at the start of each core's sweep.
    @pl.when(i == 0)
    def _():
        out_ref[...] = jnp.zeros_like(out_ref)

    # Cast to f32 in-kernel (inputs streamed in native dtype).
    o = o_ref[...].astype(jnp.float32)
    t = t_ref[...].astype(jnp.float32)
    # Note: log1p(targets) is only valid for targets > -1 (module assumes
    # non-negative regression targets), matching the PyTorch reference.
    x = jnp.abs(jnp.log1p(jnp.maximum(o, 0.0)) - jnp.log1p(t))

    if needs_mask:
        # Statically-known total row count; mask padded rows of the last tile.
        tile_idx = pl.program_id(0) * tiles_per_core + i
        row_ids = tile_idx * tile_rows + lax.broadcasted_iota(
            jnp.int32, (tile_rows, _LANES), 0)
        x = jnp.where(row_ids < n_rows, x, 0.0)

    if tile_rows % _ACC_ROWS == 0:
        # Leading-axis reduction = pure VPU adds into the resident (8, 128)
        # accumulator; cross-sublane/lane reduce deferred to the wrapper.
        out_ref[...] += jnp.sum(
            x.reshape(tile_rows // _ACC_ROWS, _ACC_ROWS, _LANES), axis=0)
    else:
        # Tiny single-block case (n_rows < _MAX_TILE_ROWS and not a multiple
        # of 8); performance irrelevant here.
        out_ref[0:1, :] += jnp.sum(x, axis=0, keepdims=True)


def trento_loss(targets, outputs, reduction="mean"):
    """L1(log1p(relu(outputs)), log1p(targets)) with the given reduction."""
    assert targets.shape == outputs.shape
    n_elems = targets.size

    o_flat = outputs.reshape(-1)
    t_flat = targets.reshape(-1)

    n_rows = n_elems // _LANES
    main = n_rows * _LANES

    # Sub-128-element remainder (rare): handled in plain JAX. This avoids a
    # full-tensor jnp.pad (which would re-read + re-write both inputs in HBM).
    tail_sum = jnp.float32(0.0)
    if main < n_elems:
        o_t = o_flat[main:].astype(jnp.float32)
        t_t = t_flat[main:].astype(jnp.float32)
        tail_sum = jnp.sum(
            jnp.abs(jnp.log1p(jnp.maximum(o_t, 0.0)) - jnp.log1p(t_t)))

    if n_rows == 0:
        total = tail_sum
    else:
        o2 = o_flat[:main].reshape(n_rows, _LANES)
        t2 = t_flat[:main].reshape(n_rows, _LANES)

        # Biggest tile that fits comfortably (multiple of 8 rows, or the full
        # array when it is small -- full-extent blocks are always legal).
        tile_rows = n_rows if n_rows <= _MAX_TILE_ROWS else _MAX_TILE_ROWS
        n_tiles = pl.cdiv(n_rows, tile_rows)
        needs_mask = (n_rows % tile_rows) != 0

        # Split tiles across (up to) two TensorCores when they divide evenly:
        # real parallelism on v7x, a harmless serial outer loop on v5e/v6e.
        ncores = 2 if (n_tiles >= 2 and n_tiles % 2 == 0) else 1
        tiles_per_core = n_tiles // ncores

        kernel = functools.partial(
            _l1_log_partial_kernel,
            n_rows=n_rows,
            tile_rows=tile_rows,
            tiles_per_core=tiles_per_core,
            needs_mask=needs_mask,
        )

        in_map = lambda c, i: (c * tiles_per_core + i, 0)

        partials = pl.pallas_call(
            kernel,
            out_shape=jax.ShapeDtypeStruct((ncores * _ACC_ROWS, _LANES),
                                           jnp.float32),
            grid_spec=pltpu.PrefetchScalarGridSpec(
                num_scalar_prefetch=0,
                grid=(ncores, tiles_per_core),
                in_specs=[
                    pl.BlockSpec((tile_rows, _LANES), in_map),
                    pl.BlockSpec((tile_rows, _LANES), in_map),
                ],
                out_specs=pl.BlockSpec((_ACC_ROWS, _LANES),
                                       lambda c, i: (c, 0)),
            ),
            compiler_params=pltpu.CompilerParams(
                dimension_semantics=("parallel", "arbitrary"),
            ),
            # If DMA is still exposed at these tile sizes, pipeline_mode=
            # pl.Buffered(3) on the two input BlockSpecs is the next lever.
        )(o2, t2)

        total = jnp.sum(partials) + tail_sum

    if reduction == "mean":
        return total / jnp.float32(n_elems)
    elif reduction == "sum":
        return total
    else:
        raise ValueError(f"unsupported reduction: {reduction}")
    # TODO(synk): reduction='none' (full elementwise tensor output) is not
    # implemented; the default module config uses reduction='mean'.


def _reference(targets, outputs):
    o = jnp.maximum(outputs.astype(jnp.float32), 0.0)
    return jnp.mean(
        jnp.abs(jnp.log1p(o) - jnp.log1p(targets.astype(jnp.float32))))


if __name__ == "__main__":
    key = jax.random.PRNGKey(0)
    k1, k2 = jax.random.split(key)

    # Small regression-style batch: NCHW model outputs and matching targets.
    shape = (2, 4, 16, 16)
    outputs = jax.random.normal(k1, shape, dtype=jnp.float32)
    # Targets are non-negative (regression on counts/intensities) so log1p is valid.
    targets = jnp.abs(jax.random.normal(k2, shape, dtype=jnp.float32))

    loss = trento_loss(targets, outputs)
    loss = jax.block_until_ready(loss)

    ref = _reference(targets, outputs)
    assert jnp.allclose(loss, ref, rtol=1e-5, atol=1e-6), (loss, ref)

    print("KERNEL_OK")
</pallas_src>

<mosaic_0001>
module attributes {stable_mosaic.version = 11 : i64} {
  func.func @_l1_log_partial_kernel(%arg0: i32, %arg1: i32, %arg2: memref<16x128xf32, #tpu.memory_space<vmem>>, %arg3: memref<16x128xf32, #tpu.memory_space<vmem>>, %arg4: memref<8x128xf32, #tpu.memory_space<vmem>>) attributes {dimension_semantics = [#tpu.dimension_semantics<parallel>, #tpu.dimension_semantics<arbitrary>], iteration_bounds = array<i64: 1, 1>, scalar_prefetch = 0 : i64, scratch_operands = 0 : i64, tpu.core_type = #tpu.core_type<tc>, window_params = [{transform_indices = @transform_0, window_bounds = array<i64: 16, 128>}, {transform_indices = @transform_1, window_bounds = array<i64: 16, 128>}, {transform_indices = @transform_2, window_bounds = array<i64: 8, 128>}]} {
    %c0_i32 = arith.constant 0 : i32
    %0 = arith.cmpi eq, %arg1, %c0_i32 : i32
    %1 = arith.extui %0 : i1 to i32
    %c0_i32_0 = arith.constant 0 : i32
    %2 = arith.cmpi ne, %1, %c0_i32_0 : i32
    scf.if %2 {
      %cst_9 = arith.constant 0.000000e+00 : f32
      %16 = vector.broadcast %cst_9 : f32 to vector<8x128xf32>
      %c0_10 = arith.constant 0 : index
      %c0_11 = arith.constant 0 : index
      %17 = vector.load %arg4[%c0_10, %c0_11] : memref<8x128xf32, #tpu.memory_space<vmem>>, vector<8x128xf32>
      tpu.vector_store %arg4[%c0_10, %c0_11], %16 {strides = array<i32>} : memref<8x128xf32, #tpu.memory_space<vmem>>, vector<8x128xf32>,
    } else {
    }
    %c0 = arith.constant 0 : index
    %c0_1 = arith.constant 0 : index
    %3 = vector.load %arg2[%c0, %c0_1] : memref<16x128xf32, #tpu.memory_space<vmem>>, vector<16x128xf32>
    %c0_2 = arith.constant 0 : index
    %c0_3 = arith.constant 0 : index
    %4 = vector.load %arg3[%c0_2, %c0_3] : memref<16x128xf32, #tpu.memory_space<vmem>>, vector<16x128xf32>
    %cst = arith.constant 0.000000e+00 : f32
    %5 = vector.broadcast %cst : f32 to vector<16x128xf32>
    %6 = arith.maximumf %3, %5 : vector<16x128xf32>
    %7 = math.log1p %6 : vector<16x128xf32>
    %8 = math.log1p %4 : vector<16x128xf32>
    %9 = arith.subf %7, %8 : vector<16x128xf32>
    %10 = math.absf %9 : vector<16x128xf32>
    %c0_4 = arith.constant 0 : index
    %c0_5 = arith.constant 0 : index
    %11 = vector.load %arg4[%c0_4, %c0_5] : memref<8x128xf32, #tpu.memory_space<vmem>>, vector<8x128xf32>
    %12 = vector.shape_cast %10 : vector<16x128xf32> to vector<2x8x128xf32>
    %cst_6 = arith.constant dense<0.000000e+00> : vector<8x128xf32>
    %13 = vector.multi_reduction <add>, %12, %cst_6 [0] : vector<2x8x128xf32> to vector<8x128xf32>
    %14 = arith.addf %11, %13 : vector<8x128xf32>
    %c0_7 = arith.constant 0 : index
    %c0_8 = arith.constant 0 : index
    %15 = vector.load %arg4[%c0_7, %c0_8] : memref<8x128xf32, #tpu.memory_space<vmem>>, vector<8x128xf32>
    tpu.vector_store %arg4[%c0_7, %c0_8], %14 {strides = array<i32>} : memref<8x128xf32, #tpu.memory_space<vmem>>, vector<8x128xf32>,
    return
  }
  func.func @transform_0(%arg0: i32, %arg1: i32) -> (i32, i32) {
    %c1_i32 = arith.constant 1 : i32
    %0 = arith.muli %arg0, %c1_i32 : i32
    %1 = arith.addi %0, %arg1 : i32
    %c0_i32 = arith.constant 0 : i32
    %c0_i32_0 = arith.constant 0 : i32
    return %1, %c0_i32 : i32, i32
  }
  func.func @transform_1(%arg0: i32, %arg1: i32) -> (i32, i32) {
    %c1_i32 = arith.constant 1 : i32
    %0 = arith.muli %arg0, %c1_i32 : i32
    %1 = arith.addi %0, %arg1 : i32
    %c0_i32 = arith.constant 0 : i32
    %c0_i32_0 = arith.constant 0 : i32
    return %1, %c0_i32 : i32, i32
  }
  func.func @transform_2(%arg0: i32, %arg1: i32) -> (i32, i32) {
    %c0_i32 = arith.constant 0 : i32
    %c0_i32_0 = arith.constant 0 : i32
    return %arg0, %c0_i32 : i32, i32
  }
}

</mosaic_0001>

<bundles_post_ra>
// kernel: tpu_custom_call.1
= control target key start
LH: loop header
LB: loop body
LE: loop exit
PB: predicated region body
PF: predicated region fallthrough
CT: control target
= control target key end

     0   :  { %7 = vsyncpa [#allocation3], 0  ;;  %s256_s0 = inlined_call_operand.hbm [shape: f32[16,128], index: 0, kind: input, shape index: {}]   ;;  %s257_s1 = inlined_call_operand.hbm [shape: f32[16,128], index: 1, kind: input, shape index: {}]   ;;  %s258_s2 = inlined_call_operand.hbm [shape: f32[8,128], index: 2, kind: output, shape index: {}]  }
   0x1   :  { %8 = vsyncpa [#allocation6], 0 }
   0x2   :  { %9 = vsyncpa [#allocation4], 0  ;;  %s18_s11 = sshll.u32 %s256_s0, 4  ;;  %s221_s12 = smov [#allocation2]   ;;  %s19_s11 = int_to_ptr.hbm [resolvable:$true] %s18_s11 }
   0x3   :  { %s20_s13 = sshll.u32 %s221_s12, 4  ;;  %s35_s16 = sshll.u32 %s257_s1, 4  ;;  %s21_s13 = int_to_ptr.vmem [resolvable:$true] %s20_s13  ;;  %s36_s16 = int_to_ptr.hbm [resolvable:$true] %s35_s16 }
   0x4   :  { %s222_s17 = smov 128   ;;  %s223_s18 = smov 8  }
   0x5   :  { %26 = dma.hbm_to_vmem [thread:$0]  %s19_s11, 256, %s21_s13, [#allocation3], %s222_s17, %s222_s17, %s223_s18  }
   0x6   :  { %s224_s19 = smov [#allocation5]  }
   0x7   :  { %s37_s20 = sshll.u32 %s224_s19, 4  ;;  %s38_s20 = int_to_ptr.vmem [resolvable:$true] %s37_s20 }
   0x8   :  { %43 = dma.hbm_to_vmem [thread:$0]  %s36_s16, 256, %s38_s20, [#allocation6], %s222_s17, %s222_s17, %s223_s18  }
   0x9   :  { %215 = dma.done.wait [#allocation3], 256  }
   0xa   :  { %216 = vsyncadd [#allocation3], 4294967040 }
   0xb   :  { %217 = dma.done.wait [#allocation6], 256  }
   0xc   :  { %218 = vsyncadd [#allocation6], 4294967040  ;;  %v61_v0 = vld [vmem:[#allocation2] sm:$0xff]  ;;  %v62_v1 = vld [vmem:[#allocation2 + $0x8] sm:$0xff]  ;;  %s225_s0 = smov [#allocation7]   ;;  %s118_s23 = sshll.u32 %s258_s2, 4  ;;  %s119_s23 = int_to_ptr.hbm [resolvable:$true] %s118_s23 }
   0xd   :  { %v63_v2 = vld [vmem:[#allocation5] sm:$0xff]  ;;  %v64_v3 = vld [vmem:[#allocation5 + $0x8] sm:$0xff]  ;;  %v65_v4 = vmax.f32 %v61_v0, 0.0  ;;  %v66_v5 = vmax.f32 %v62_v1, 0.0  ;;  %s116_s1 = sshll.u32 %s225_s0, 4  ;;  %s117_s1 = int_to_ptr.vmem [resolvable:$true] %s116_s1 }
   0xe   :  { %v85_v6 = vadd.f32 1.0, %v63_v2  ;;  %v88_v7 = vmul.f32 -0.5, %v63_v2  ;;  %v94_v11 = vadd.f32 1.0, %v64_v3  ;;  %v97_v13 = vmul.f32 -0.5, %v64_v3 }
   0xf   :  { %v67_v8 = vadd.f32 1.0, %v65_v4  ;;  %v70_v9 = vmul.f32 -0.5, %v65_v4  ;;  %v76_v10 = vadd.f32 1.0, %v66_v5  ;;  %v79_v12 = vmul.f32 -0.5, %v66_v5 }
  0x10   :  { %135 = vlog2.f32 %v85_v6  ;;  %v89_v14 = vadd.f32 1.0, %v88_v7  ;;  %v91_v16 = vand.u32 2147483647, %v63_v2  ;;  %v73_v17 = vand.u32 2147483647, %v65_v4 }
  0x11   :  { %137 = vlog2.f32 %v67_v8  ;;  %v71_v15 = vadd.f32 1.0, %v70_v9  ;;  %v80_v18 = vadd.f32 1.0, %v79_v12  ;;  %v82_v19 = vand.u32 2147483647, %v66_v5 }
  0x12   :  { %139 = vlog2.f32 %v76_v10  ;;  %v98_v20 = vadd.f32 1.0, %v97_v13  ;;  %v90_v21 = vmul.f32 %v89_v14, %v63_v2  ;;  %v100_v22 = vand.u32 2147483647, %v64_v3 }
  0x13   :  { %141 = vlog2.f32 %v94_v11  ;;  %v72_v24 = vmul.f32 %v71_v15, %v65_v4  ;;  %vm247_vm0 = vcmp.lt.f32.partialorder %v91_v16, 0.0004427343  ;;  %vm74_vm1 = vcmp.lt.f32.partialorder %v73_v17, 0.0004427343 }
  0x14   :  { %v81_v27 = vmul.f32 %v80_v18, %v66_v5  ;;  %vm83_vm2 = vcmp.lt.f32.partialorder %v82_v19, 0.0004427343  ;;  %v99_v31 = vmul.f32 %v98_v20, %v64_v3  ;;  %vm101_vm3 = vcmp.lt.f32.partialorder %v100_v22, 0.0004427343 }
  0x16   :  { %v136_v23 = vpop.eup %135 }
  0x17   :  { %v138_v26 = vpop.eup %137  ;;  %v87_v28 = vmul.f32 0.6931472, %v136_v23 }
  0x18   :  { %v140_v29 = vpop.eup %139  ;;  %v69_v30 = vmul.f32 0.6931472, %v138_v26 }
  0x19   :  { %v142_v32 = vpop.eup %141  ;;  %v78_v33 = vmul.f32 0.6931472, %v140_v29  ;;  %v93_v34 = vsel %vm247_vm0, %v90_v21, %v87_v28 }
  0x1a   :  { %v75_v35 = vsel %vm74_vm1, %v72_v24, %v69_v30  ;;  %v96_v36 = vmul.f32 0.6931472, %v142_v32 }
  0x1b   :  { %v84_v37 = vsel %vm83_vm2, %v81_v27, %v78_v33  ;;  %v103_v38 = vsub.f32 %v75_v35, %v93_v34 }
  0x1c   :  { %v102_v39 = vsel %vm101_vm3, %v99_v31, %v96_v36 }
  0x1d   :  { %v104_v40 = vsub.f32 %v84_v37, %v102_v39  ;;  %v105_v41 = vand.u32 2147483647, %v103_v38 }
  0x1f   :  { %v106_v42 = vand.u32 2147483647, %v104_v40 }
  0x21   :  { %v108_v43 = vadd.f32 %v106_v42, %v105_v41 }
  0x23   :  { %110 = vst [vmem:[#allocation7] sm:$0xff] %v108_v43 }
  0x24   :  { %121 = dma.vmem_to_hbm [thread:$0]  %s117_s1, 128, %s119_s23, [#allocation4]  }
  0x25   :  { %219 = dma.done.wait [#allocation4], 128  }
  0x26   :  { %220 = vsyncadd [#allocation4], 4294967168 }
  0x27   :  { %126 = vsyncpa [#allocation3], 1 }
  0x28   :  { %127 = vsyncpa [#allocation6], 1 }
  0x29   :  { %128 = vsyncpa [#allocation4], 1 }

</bundles_post_ra>
